<compile_context>
chip_gen: v7x
topology: tpu7x:2x2x1
jax: 0.10.0
libtpu: 0.0.40
codegen_flags: <defaults>
</compile_context>

<pallas_src>
import jax
import jax.numpy as jnp
from jax.experimental import pallas as pl
from jax.experimental.pallas import tpu as pltpu


def _tfdiff_loss_kernel(t_ref, e_ref, cos_ref, sin_ref, o_ref):
    # t_ref / e_ref: [N, TM] in the input dtype, lanes interleaved as (re, im) pairs.
    # Cast on the VMEM tile (not in the wrapper) so HBM traffic stays at input width.
    d = t_ref[...].astype(jnp.float32) - e_ref[...].astype(jnp.float32)

    # ---- time-domain partial: sum(|t - e|^2) over this tile's complex elements
    t_sum = jnp.sum(d * d)

    # ---- lane swizzle: per (re, im) pair -> (im, -re).  TM is even, so pairs never
    #      straddle a tile boundary and circular wrap-around lands only on masked lanes.
    n, tm = d.shape
    lane = jax.lax.broadcasted_iota(jnp.int32, (n, tm), 1)
    is_re = (lane & 1) == 0
    d_sw = jnp.where(is_re, pltpu.roll(d, tm - 1, 1), -pltpu.roll(d, 1, 1))

    # ---- DFT along the N (sublane / contraction) axis with F = C - i*S:
    #      even lanes: C@dr + S@di = Re(DFT(d));  odd lanes: C@di - S@dr = Im(DFT(d))
    f = (jnp.dot(cos_ref[...], d, preferred_element_type=jnp.float32)
         + jnp.dot(sin_ref[...], d_sw, preferred_element_type=jnp.float32))
    f_sum = jnp.sum(f * f)

    o_ref[...] = (t_sum + f_sum)[None, None]


def _pick_lane_tile(d2, n, itemsize):
    """Lane tile over the interleaved (re, im) axis.

    Full width when not 128-divisible (block == full dim is always legal); otherwise
    the largest of 1024/512/256/128 that divides it AND keeps the double-buffered
    target/est tiles plus the resident NxN cos/sin matrices under a conservative
    VMEM budget (safe for the 64 MiB-VMEM v7x TensorCore).
    """
    if d2 % 128 != 0:
        return d2
    dft_bytes = 2 * 2 * n * n * 4                     # cos+sin, allow double-buffer
    budget = max(24 * 1024 * 1024 - dft_bytes, 4 * 1024 * 1024)
    for tm in (1024, 512, 256, 128):
        if d2 % tm == 0 and 2 * 2 * n * tm * itemsize <= budget:
            return tm
    return 128


def tfdiff_loss(target, est, target_noise=None, est_noise=None, *, w=0.1):
    """target, est: [B, N, D, 2] float (last dim = real/imag)."""
    assert target.shape == est.shape and target.shape[-1] == 2
    B, N, D, _ = target.shape
    D2 = 2 * D

    # Free trailing-dim reshape (no transpose, no dtype widening -> no extra HBM pass).
    t2 = target.reshape(B, N, D2)
    e2 = est.reshape(B, N, D2)

    # DFT matrices: theta = 2*pi*(k*n mod N)/N, with the mod taken in integer
    # arithmetic so the phase stays exact for large N.
    idx = jnp.arange(N, dtype=jnp.int32)
    kn_mod = (idx[:, None] * idx[None, :]) % N
    theta = (2.0 * jnp.pi / float(N)) * kn_mod.astype(jnp.float32)
    cos_m = jnp.cos(theta)
    sin_m = jnp.sin(theta)

    TM = _pick_lane_tile(D2, N, jnp.dtype(t2.dtype).itemsize)
    num_m = D2 // TM

    partials = pl.pallas_call(
        _tfdiff_loss_kernel,
        out_shape=jax.ShapeDtypeStruct((B, num_m, 1, 1), jnp.float32),
        grid_spec=pltpu.PrefetchScalarGridSpec(
            num_scalar_prefetch=0,
            grid=(B, num_m),
            in_specs=[
                pl.BlockSpec((None, N, TM), lambda b, m: (b, 0, m)),  # target (interleaved)
                pl.BlockSpec((None, N, TM), lambda b, m: (b, 0, m)),  # est (interleaved)
                pl.BlockSpec((N, N), lambda b, m: (0, 0)),            # DFT cos (resident)
                pl.BlockSpec((N, N), lambda b, m: (0, 0)),            # DFT sin (resident)
            ],
            out_specs=pl.BlockSpec((None, None, 1, 1), lambda b, m: (b, m, 0, 0)),
        ),
        compiler_params=pltpu.CompilerParams(
            dimension_semantics=("parallel", "parallel"),
            vmem_limit_bytes=48 * 1024 * 1024,
        ),
    )(t2, e2, cos_m, sin_m)

    inv_count = 1.0 / float(B * N * D)
    loss = jnp.sum(partials) * inv_count

    # TODO(synk): PyTorch's `if target_noise and est_noise` is ill-defined for tensors;
    # we take "both provided" to mean compute n_loss (tiny op, done in plain JAX),
    # otherwise n_loss = 0.0 as in the None path.
    if target_noise is not None and est_noise is not None:
        dn = target_noise.astype(jnp.float32) - est_noise.astype(jnp.float32)
        n_loss = jnp.mean(jnp.sum(dn * dn, axis=-1))
    else:
        n_loss = 0.0

    return loss + w * n_loss


if __name__ == "__main__":
    key = jax.random.PRNGKey(0)

    def reference(target, est):
        tc = target[..., 0] + 1j * target[..., 1]
        ec = est[..., 0] + 1j * est[..., 1]
        t_loss = jnp.mean(jnp.abs(tc - ec) ** 2)
        f_loss = jnp.mean(jnp.abs(jnp.fft.fft(tc, axis=1) - jnp.fft.fft(ec, axis=1)) ** 2)
        return t_loss + f_loss

    # Small shape consistent with the module: batch=2, fft axis N=8, feature D=16.
    k1, k2 = jax.random.split(key)
    target = jax.random.normal(k1, (2, 8, 16, 2), dtype=jnp.float32)
    est = jax.random.normal(k2, (2, 8, 16, 2), dtype=jnp.float32)
    out = jax.block_until_ready(tfdiff_loss(target, est))
    ref = reference(target, est)
    assert jnp.allclose(out, ref, rtol=1e-4, atol=1e-4), (float(out), float(ref))

    # Second shape exercising a wide, 128-aligned lane axis (pipelined path).
    k3, k4 = jax.random.split(k2)
    target2 = jax.random.normal(k3, (2, 16, 512, 2), dtype=jnp.float32)
    est2 = jax.random.normal(k4, (2, 16, 512, 2), dtype=jnp.float32)
    out2 = jax.block_until_ready(tfdiff_loss(target2, est2))
    ref2 = reference(target2, est2)
    assert jnp.allclose(out2, ref2, rtol=1e-3, atol=1e-3), (float(out2), float(ref2))

    print("KERNEL_OK")
</pallas_src>

<mosaic_0001>
module attributes {stable_mosaic.version = 11 : i64} {
  func.func @_tfdiff_loss_kernel(%arg0: i32, %arg1: i32, %arg2: memref<1x8x32xf32, #tpu.memory_space<vmem>>, %arg3: memref<1x8x32xf32, #tpu.memory_space<vmem>>, %arg4: memref<8x8xf32, #tpu.memory_space<vmem>>, %arg5: memref<8x8xf32, #tpu.memory_space<vmem>>, %arg6: memref<1x1x1x1xf32, #tpu.memory_space<vmem>>) attributes {dimension_semantics = [#tpu.dimension_semantics<parallel>, #tpu.dimension_semantics<parallel>], iteration_bounds = array<i64: 2, 1>, scalar_prefetch = 0 : i64, scratch_operands = 0 : i64, tpu.core_type = #tpu.core_type<tc>, window_params = [{transform_indices = @transform_0, window_bounds = array<i64: 1, 8, 32>}, {transform_indices = @transform_1, window_bounds = array<i64: 1, 8, 32>}, {pipeline_mode = #tpu.pipeline_mode<synchronous>, transform_indices = @transform_2, window_bounds = array<i64: 8, 8>}, {pipeline_mode = #tpu.pipeline_mode<synchronous>, transform_indices = @transform_3, window_bounds = array<i64: 8, 8>}, {transform_indices = @transform_4, window_bounds = array<i64: 1, 1, 1, 1>}]} {
    %c0 = arith.constant 0 : index
    %c0_0 = arith.constant 0 : index
    %c0_1 = arith.constant 0 : index
    %0 = vector.load %arg2[%c0, %c0_0, %c0_1] : memref<1x8x32xf32, #tpu.memory_space<vmem>>, vector<1x8x32xf32>
    %1 = vector.shape_cast %0 : vector<1x8x32xf32> to vector<8x32xf32>
    %c0_2 = arith.constant 0 : index
    %c0_3 = arith.constant 0 : index
    %c0_4 = arith.constant 0 : index
    %2 = vector.load %arg3[%c0_2, %c0_3, %c0_4] : memref<1x8x32xf32, #tpu.memory_space<vmem>>, vector<1x8x32xf32>
    %3 = vector.shape_cast %2 : vector<1x8x32xf32> to vector<8x32xf32>
    %4 = arith.subf %1, %3 : vector<8x32xf32>
    %5 = arith.mulf %4, %4 : vector<8x32xf32>
    %6 = vector.shape_cast %5 : vector<8x32xf32> to vector<1x8x32xf32>
    %cst = arith.constant dense<0.000000e+00> : vector<1xf32>
    %7 = vector.multi_reduction <add>, %6, %cst [1, 2] : vector<1x8x32xf32> to vector<1xf32>
    %8 = vector.shape_cast %7 : vector<1xf32> to vector<1x1x1xf32>
    %9 = vector.extract %8[0, 0, 0] : f32 from vector<1x1x1xf32>
    %10 = tpu.iota {dimensions = array<i32: 1>} : vector<8x32xi32>
    %c1_i32 = arith.constant 1 : i32
    %11 = vector.broadcast %c1_i32 : i32 to vector<8x32xi32>
    %12 = arith.andi %10, %11 : vector<8x32xi32>
    %c0_i32 = arith.constant 0 : i32
    %13 = vector.broadcast %c0_i32 : i32 to vector<8x32xi32>
    %14 = arith.cmpi eq, %12, %13 : vector<8x32xi32>
    %c31_i32 = arith.constant 31 : i32
    %15 = tpu.dynamic_rotate %4 by %c31_i32 dim 1 : vector<8x32xf32>, i32 -> vector<8x32xf32>
    %c1_i32_5 = arith.constant 1 : i32
    %16 = tpu.dynamic_rotate %4 by %c1_i32_5 dim 1 : vector<8x32xf32>, i32 -> vector<8x32xf32>
    %cst_6 = arith.constant 0.000000e+00 : f32
    %17 = vector.broadcast %cst_6 : f32 to vector<8x32xf32>
    %18 = arith.subf %17, %16 : vector<8x32xf32>
    %19 = arith.select %14, %15, %18 : vector<8x32xi1>, vector<8x32xf32>
    %c0_7 = arith.constant 0 : index
    %c0_8 = arith.constant 0 : index
    %20 = vector.load %arg4[%c0_7, %c0_8] : memref<8x8xf32, #tpu.memory_space<vmem>>, vector<8x8xf32>
    %cst_9 = arith.constant dense<0.000000e+00> : vector<8x32xf32>
    %21 = tpu.matmul %20, %4, %cst_9 {dimension_numbers = #tpu.dot_dimension_numbers<[1], [0], [0], [1], [0, 0, 1, 1], [], []>} : vector<8x8xf32>, vector<8x32xf32>, vector<8x32xf32> -> vector<8x32xf32>
    %c0_10 = arith.constant 0 : index
    %c0_11 = arith.constant 0 : index
    %22 = vector.load %arg5[%c0_10, %c0_11] : memref<8x8xf32, #tpu.memory_space<vmem>>, vector<8x8xf32>
    %cst_12 = arith.constant dense<0.000000e+00> : vector<8x32xf32>
    %23 = tpu.matmul %22, %19, %cst_12 {dimension_numbers = #tpu.dot_dimension_numbers<[1], [0], [0], [1], [0, 0, 1, 1], [], []>} : vector<8x8xf32>, vector<8x32xf32>, vector<8x32xf32> -> vector<8x32xf32>
    %24 = arith.addf %21, %23 : vector<8x32xf32>
    %25 = arith.mulf %24, %24 : vector<8x32xf32>
    %26 = vector.shape_cast %25 : vector<8x32xf32> to vector<1x8x32xf32>
    %cst_13 = arith.constant dense<0.000000e+00> : vector<1xf32>
    %27 = vector.multi_reduction <add>, %26, %cst_13 [1, 2] : vector<1x8x32xf32> to vector<1xf32>
    %28 = vector.shape_cast %27 : vector<1xf32> to vector<1x1x1xf32>
    %29 = vector.extract %28[0, 0, 0] : f32 from vector<1x1x1xf32>
    %30 = arith.addf %9, %29 : f32
    %31 = vector.broadcast %30 : f32 to vector<1x1xf32>
    %c0_14 = arith.constant 0 : index
    %c0_15 = arith.constant 0 : index
    %c0_16 = arith.constant 0 : index
    %c0_17 = arith.constant 0 : index
    %32 = vector.load %arg6[%c0_14, %c0_15, %c0_16, %c0_17] : memref<1x1x1x1xf32, #tpu.memory_space<vmem>>, vector<1x1x1x1xf32>
    %33 = vector.shape_cast %32 : vector<1x1x1x1xf32> to vector<1x1xf32>
    %34 = vector.shape_cast %31 : vector<1x1xf32> to vector<1x1x1x1xf32>
    tpu.vector_store %arg6[%c0_14, %c0_15, %c0_16, %c0_17], %34 {strides = array<i32>} : memref<1x1x1x1xf32, #tpu.memory_space<vmem>>, vector<1x1x1x1xf32>,
    return
  }
  func.func @transform_0(%arg0: i32, %arg1: i32) -> (i32, i32, i32) {
    %c0_i32 = arith.constant 0 : i32
    %c0_i32_0 = arith.constant 0 : i32
    return %arg0, %c0_i32, %arg1 : i32, i32, i32
  }
  func.func @transform_1(%arg0: i32, %arg1: i32) -> (i32, i32, i32) {
    %c0_i32 = arith.constant 0 : i32
    %c0_i32_0 = arith.constant 0 : i32
    return %arg0, %c0_i32, %arg1 : i32, i32, i32
  }
  func.func @transform_2(%arg0: i32, %arg1: i32) -> (i32, i32) {
    %c0_i32 = arith.constant 0 : i32
    %c0_i32_0 = arith.constant 0 : i32
    %c0_i32_1 = arith.constant 0 : i32
    return %c0_i32, %c0_i32_0 : i32, i32
  }
  func.func @transform_3(%arg0: i32, %arg1: i32) -> (i32, i32) {
    %c0_i32 = arith.constant 0 : i32
    %c0_i32_0 = arith.constant 0 : i32
    %c0_i32_1 = arith.constant 0 : i32
    return %c0_i32, %c0_i32_0 : i32, i32
  }
  func.func @transform_4(%arg0: i32, %arg1: i32) -> (i32, i32, i32, i32) {
    %c0_i32 = arith.constant 0 : i32
    %c0_i32_0 = arith.constant 0 : i32
    %c0_i32_1 = arith.constant 0 : i32
    return %arg0, %arg1, %c0_i32, %c0_i32_0 : i32, i32, i32, i32
  }
}

</mosaic_0001>

<bundles_post_ra>
// kernel: tpu_custom_call.1
= control target key start
LH: loop header
LB: loop body
LE: loop exit
PB: predicated region body
PF: predicated region fallthrough
CT: control target
= control target key end

     0   :  { %9 = vsyncpa [#allocation3], 0  ;;  %s1095_s0 = inlined_call_operand.hbm [shape: f32[2,8,32], index: 0, kind: input, shape index: {}]   ;;  %s1096_s1 = inlined_call_operand.hbm [shape: f32[2,8,32], index: 1, kind: input, shape index: {}]   ;;  %s1097_s2 = inlined_call_operand.hbm [shape: f32[8,8], index: 2, kind: input, shape index: {}]   ;;  %s1098_s3 = inlined_call_operand.vmem [shape: f32[8,8], index: 3, kind: input, shape index: {}]   ;;  %s1099_s4 = inlined_call_operand.vmem [shape: f32[2,1,1,1], index: 4, kind: output, shape index: {}]  }
   0x1   :  { %11 = vsyncpa [#allocation3 + $0x1], 0 }
   0x2   :  { %12 = vsyncpa [#allocation5], 0 }
   0x3   :  { %14 = vsyncpa [#allocation5 + $0x1], 0  ;;  %s890_s15 = smov 0   ;;  %s892_s16 = smov 0  }
   0x4   :  { %s894_s17 = smov 0   ;;  %s896_s18 = smov 0  }
   0x5   :  { %s898_s19 = smov 0   ;;  %s900_s20 = smov 0  }
   0x6 LB: > { %s1104_s21 = sadd.s32 4294967295, %s855_s20   ;;  %p54_p0 = scmp.ne.s32.totalorder %s839_s16, %s835_s15  ;;  %s855_s20 = sphi %s900_s20, %s20_s20   ;;  %s851_s19 = sphi %s898_s19, %s1120_s19   ;;  %s847_s18 = sphi %s896_s18, %s1119_s18   ;;  %s843_s17 = sphi %s894_s17, %s1118_s17   ;;  %s839_s16 = sphi %s892_s16, %s1117_s16   ;;  %s835_s15 = sphi %s890_s15, %s1116_s15  }
   0x7   : > { %p922_p1 = scmp.eq.s32.totalorder %s1104_s21, 0  ;;  %p599_p2 = scmp.ge.s32.totalorder %s855_s20, 1 }
   0x8   : > { %p163_p3 = scmp.lt.s32.totalorder %s855_s20, 3  ;;  %s857_s25 = smov [#allocation6]  }
   0x9   : > { %s1105_s22 = scalar_select %p922_p1, 1, 0 }
   0xa   : > { %p930_p4 = por %p922_p1, %p54_p0  ;;  %p934_p5 = pnand %p599_p2, %p163_p3 }
   0xb   : > { %s176_s26 = sshll.u32 %s857_s25, 4  ;;  %s32_s28 = sadd.s32 1, %s851_s19  ;;  %s177_s26 = int_to_ptr.vmem [resolvable:$true] %s176_s26 }
   0xc   : > { %s1106_s23 = scalar_select %p930_p4, 1, 0 }
   0xd   : > { %s1107_s24 = scalar_select %p934_p5, 1, 0 }
   0xe   : > { %p641_p6 = pneg %p934_p5  ;;  %s41_s29 = sadd.s32 1, %s843_s17 }
   0xf   : > { %p948_p8 = scmp.ge.s32.totalorder %s32_s28, 2  ;;  %s709_s7 = scalar_lea.hbm %s1097_s2, 128 }
  0x10   : > { %p942_p7 = pnand %p641_p6, %p922_p1  ;;  %p710_p9 = scmp.ne.s32.totalorder %s1097_s2, %s709_s7 }
  0x11   : > { %s1109_s30 = scalar_select %p948_p8, 1, 0 }
  0x12   : > { %p711_p10 = pneg %p942_p7  ;;  %p716_p13 = scmp.lt.u32.totalorder %s709_s7, %s1097_s2 }
  0x14   : > { %p712_p11 = pnand %p711_p10, %p710_p9 }
  0x16   : > { %p713_p12 = pneg %p712_p11 }
  0x18   : > { %p718_p0 = pnand %p716_p13, %p713_p12 }
  0x1a   : > { %721 = shalt.err (!%p718_p0)
}
  0x1b   : > { %s722_s12 = scalar_lea.vmem %s177_s26, 128  ;;  %p730_p1 = scmp.lt.s32.totalorder %s177_s26, %s177_s26 }
  0x1c   : > { %p723_p2 = scmp.ne.s32.totalorder %s177_s26, %s722_s12  ;;  %p731_p4 = scmp.lt.s32.totalorder %s722_s12, %s722_s12 }
  0x1e   : > { %p725_p3 = pnand %p723_p2, %p711_p10  ;;  %p732_p5 = por %p731_p4, %p730_p1 }
  0x20   : > { %p726_p6 = pneg %p725_p3 }
  0x22   : > { %p733_p8 = pnand %p732_p5, %p726_p6 }
  0x24   : > { %736 = shalt.err (!%p733_p8)
}
  0x25   : > { %644 = dma.hbm_to_vmem [thread:$0]  (!%p942_p7), %s1097_s2, 128, %s177_s26, [#allocation5]  }
  0x26   : > { %p1110_p9 = scmp.ne.s32.totalorder %s1109_s30, 0  ;;  %p48_p1 = scmp.ne.s32.totalorder %s843_s17, %s839_s16 }
  0x27   : > { %p49_p4 = scmp.eq.s32.totalorder %s855_s20, 0  ;;  %p653_p5 = scmp.lt.s32.totalorder %s855_s20, 2 }
  0x28   : > { %s1122_s28 = smov (%p1110_p9, %s32_s28), 0  ;;  %s190_s25 = sand.u32 1, %s843_s17  }
  0x29   : > { %s36_s15 = ssub.s32 %s851_s19, %s1122_s28  ;;  %p50_p10 = por %p49_p4, %p48_p1 }
  0x2a   : > { %p39_p8 = scmp.eq.s32.totalorder %s36_s15, 0  ;;  %s603_s27 = sshll.u32 %s851_s19, 7 }
  0x2b   : > { %s985_s6 = sshll.u32 %s190_s25, 3  ;;  %s990_s26 = scalar_lea.hbm %s1095_s0, %s603_s27 }
  0x2c   : > { %s983_s5 = scalar_select %p39_p8, %s843_s17, %s41_s29  }
  0x2d   : > { %s194_s30 = scalar_lea.vmem [#allocation2], %s985_s6  ;;  %p993_p7 = pnand %p653_p5, %p50_p10 }
  0x2e   : > { %s202_s9 = sshll.u32 %s194_s30, 4  ;;  %s1002_s12 = scalar_lea.hbm %s1096_s1, %s603_s27  ;;  %s997_s9 = int_to_ptr.vmem [resolvable:$true] %s202_s9 }
  0x2f   : > { %s191_s13 = scalar_lea.sflag [#allocation3], %s190_s25  ;;  %s737_s14 = scalar_lea.hbm %s990_s26, 128 }
  0x30   : > { %p738_p11 = scmp.ne.s32.totalorder %s990_s26, %s737_s14  ;;  %p739_p12 = pneg %p993_p7 }
  0x31   : > { %s742_s8 = scalar_lea.hbm %s1095_s0, 256  ;;  %p743_p2 = scmp.lt.u32.totalorder %s990_s26, %s1095_s0 }
  0x32   : > { %p740_p13 = pnand %p739_p12, %p738_p11  ;;  %p744_p3 = scmp.lt.u32.totalorder %s742_s8, %s737_s14 }
  0x33   : > { %p746_p9 = scmp.lt.u32.totalorder %s737_s14, %s990_s26 }
  0x34   : > { %p741_p0 = pneg %p740_p13  ;;  %p745_p6 = por %p744_p3, %p743_p2 }
  0x36   : > { %p747_p1 = por %p746_p9, %p745_p6 }
  0x38   : > { %p748_p4 = pnand %p747_p1, %p741_p0 }
  0x3a   : > { %751 = shalt.err (!%p748_p4)
}
  0x3b   : > { %s752_s25 = scalar_lea.vmem %s997_s9, 128  ;;  %s858_s27 = smov [#allocation2]  }
  0x3c   : > { %p753_p5 = scmp.ne.s32.totalorder %s997_s9, %s752_s25  ;;  %s757_s29 = sshll.u32 %s858_s27, 4  ;;  %s758_s29 = int_to_ptr.vmem [resolvable:$false] %s757_s29 }
  0x3d   : > { %s759_s21 = scalar_lea.vmem %s758_s29, 256  ;;  %p760_p11 = scmp.lt.s32.totalorder %s997_s9, %s758_s29 }
  0x3e   : > { %p755_p8 = pnand %p753_p5, %p739_p12  ;;  %p761_p13 = scmp.lt.s32.totalorder %s759_s21, %s752_s25 }
  0x40   : > { %p756_p10 = pneg %p755_p8  ;;  %p762_p2 = por %p761_p13, %p760_p11 }
  0x42   : > { %p763_p3 = pnand %p762_p2, %p756_p10 }
  0x44   : > { %766 = shalt.err (!%p763_p3)
}
  0x45   : > { %648 = dma.hbm_to_vmem [thread:$0]  (!%p993_p7), %s990_s26, 128, %s997_s9, %s191_s13  }
  0x46   : > { %s209_s11 = sand.u32 1, %s855_s20   ;;  %s213_s14 = scalar_lea.vmem [#allocation4], %s985_s6 }
  0x47   : > { %s221_s15 = sshll.u32 %s213_s14, 4  ;;  %s210_s7 = scalar_lea.sflag [#allocation5], %s209_s11  ;;  %s222_s15 = int_to_ptr.vmem [resolvable:$true] %s221_s15 }
  0x48   : > { %s767_s8 = scalar_lea.hbm %s1002_s12, 128  ;;  %s772_s27 = scalar_lea.hbm %s1096_s1, 256 }
  0x49   : > { %p768_p0 = scmp.ne.s32.totalorder %s1002_s12, %s767_s8  ;;  %p773_p1 = scmp.lt.u32.totalorder %s1002_s12, %s1096_s1 }
  0x4a   : > { %p774_p4 = scmp.lt.u32.totalorder %s772_s27, %s767_s8  ;;  %p776_p8 = scmp.lt.u32.totalorder %s767_s8, %s1002_s12 }
  0x4b   : > { %p770_p6 = pnand %p768_p0, %p739_p12 }
  0x4c   : > { %p775_p5 = por %p774_p4, %p773_p1 }
  0x4d   : > { %p771_p9 = pneg %p770_p6 }
  0x4e   : > { %p777_p10 = por %p776_p8, %p775_p5 }
  0x50   : > { %p778_p11 = pnand %p777_p10, %p771_p9 }
  0x52   : > { %781 = shalt.err (!%p778_p11)
}
  0x53   : > { %s782_s6 = scalar_lea.vmem %s222_s15, 128  ;;  %s859_s26 = smov [#allocation4]  }
  0x54   : > { %p783_p13 = scmp.ne.s32.totalorder %s222_s15, %s782_s6  ;;  %s787_s9 = sshll.u32 %s859_s26, 4  ;;  %s788_s9 = int_to_ptr.vmem [resolvable:$false] %s787_s9 }
  0x55   : > { %s789_s13 = scalar_lea.vmem %s788_s9, 256  ;;  %p790_p0 = scmp.lt.s32.totalorder %s222_s15, %s788_s9 }
  0x56   : > { %p785_p2 = pnand %p783_p13, %p739_p12  ;;  %p791_p6 = scmp.lt.s32.totalorder %s789_s13, %s782_s6 }
  0x58   : > { %p786_p3 = pneg %p785_p2  ;;  %p792_p1 = por %p791_p6, %p790_p0 }
  0x5a   : > { %p793_p4 = pnand %p792_p1, %p786_p3 }
  0x5c   : > { %796 = shalt.err (!%p793_p4)
}
  0x5d   : > { %651 = dma.hbm_to_vmem [thread:$0]  (!%p993_p7), %s1002_s12, 128, %s222_s15, %s210_s7  }
  0x5e   : > { %p1112_p9 = scmp.ne.s32.totalorder %s1107_s24, 0 }
  0x5f   : > { %s232_s11 = sand.u32 (!%p1112_p9), 1, %s839_s16   ;;  %p1113_p12 = scmp.ne.s32.totalorder (!%p1112_p9), %s1106_s23, 0 }
  0x60   : > { %230 = sbr.rel (%p1112_p9) target bundleno = 892 (0x37c), region = 36  ;;  %s607_s14 = sshll.u32 (!%p1112_p9), %s232_s11, 3 }
  0x61   : > { %s233_s8 = scalar_lea.sflag (!%p1112_p9), [#allocation3], %s232_s11  ;;  %s236_s30 = scalar_lea.vmem (!%p1112_p9), [#allocation2], %s607_s14 }
  0x67   : > { %822 = dma.done.wait (%p1113_p12), %s233_s8, 128  }
  0x68   : > { %824 = vsyncadd (%p1113_p12), %s233_s8, 4294967168  ;;  %s1114_s25 = sadd.s32 4294967295, %s855_s20   ;;  %s245_s12 = scalar_lea.vmem [#allocation4], %s607_s14 }
  0x69   : > { %s241_s10 = sand.u32 1, %s1114_s25  }
  0x6a   : > { %s242_s27 = scalar_lea.sflag [#allocation5], %s241_s10 }
  0x6b   : > { %826 = dma.done.wait (%p1113_p12), %s242_s27, 128  }
  0x6c   : > { %828 = vsyncadd (%p1113_p12), %s242_s27, 4294967168  ;;  %p1115_p7 = scmp.ne.s32.totalorder %s1105_s22, 0 }
  0x6e   : > { %830 = dma.done.wait (%p1115_p7), [#allocation5], 128  }
  0x6f   : > { %832 = vsyncadd (%p1115_p7), [#allocation5], 4294967168  ;;  %v286_v0 = vld [vmem:[%s236_s30] sm:$0xff]  ;;  %v287_v1 = vld [vmem:[%s245_s12] sm:$0xff]  ;;  %s860_s24 = smov 32   ;;  %vm305_vm0 = vcmask 1047808   ;;  %v301_v10 = vlaneseq }
  0x70   : > { %v288_v2 = vsub.f32 %v286_v0, %v287_v1  ;;  %v861_v5 = vmov 0.0   ;;  %vm862_vm1 = vmmov 0   ;;  %v322_v6 = vld [vmem:[#allocation6] sm:$0xff]  ;;  %vm324_vm2 = vcmask 64512   ;;  %s863_s22 = smov 127   ;;  %s864_s23 = smov 97  }
  0x71   : > { %623 = vmatprep.subr.mxu0 %v861_v5  ;;  %618 = vmatprep.subr.mxu1 %v861_v5  ;;  %v302_v11 = vand.u32 127, %v301_v10  ;;  %v323_v15 = vld [vmem:[%s1098_s3] sm:$0xff]  ;;  %vm290_vm4 = vcmask 261120   ;;  %p280_p5 = scmp.lt.s32.totalorder %s847_s18, 1  ;;  %vm484_vm5 = vcmask 0  }
  0x72   : > { %306 = vrot.lane.b32.xlu0 %v288_v2, %s860_s24  ;;  %624 = vmatpush3.msra.mxu0 %v288_v2  ;;  %v289_v17 = vmul.f32 %v288_v2, %v288_v2 }
  0x73   : > { %625 = vmatprep.mubr.msk.f32.mxu0 %vm862_vm1, %v861_v5  ;;  %620 = vmatprep.mubr.msk.f32.mxu1 %vm862_vm1, %v861_v5  ;;  %v303_v12 = vand.u32 1, %v302_v11  ;;  %s1124_s18 = smov (!%p280_p5, %s847_s18), 1 }
  0x74   : > { %626 = vmatmul.mubr.msk.f32.vlgmr.msra.gmra.mrb[0].mxu0 %vm324_vm2, %v322_v6  ;;  %v291_v19 = vsel %vm290_vm4, %v289_v17, 0.0  ;;  %s285_s9 = scalar_lea.vmem %s1099_s4, %s1124_s18 }
  0x75   : > { %vm304_vm3 = vcmp.eq.s32.totalorder %v303_v12, 0 }
  0xe4   : > { %v307_v3 = vpop.permute.xlu0 %306 }
  0xe5   : > { %v308_v4 = vsel %vm305_vm0, %v307_v3, %v288_v2 }
  0xe6   : > { %309 = vrot.lane.b32.xlu0 %v308_v4, %s860_s24 }
 0x105   : > { %292 = vadd.xlane.f32.xlu0 %v291_v19 }
 0x147   : > { %v467_v18 = vpop.f32.mrb[0].mxu0 }
 0x148   : > { %v627_v20 = vpop.f32.mrb[1].mxu0 }
 0x158   : > { %v310_v7 = vpop.permute.xlu0 %309 }
 0x159   : > { %v311_v8 = vsel %vm305_vm0, %v310_v7, %v288_v2 }
 0x15a   : > { %314 = vrot.lane.b32.xlu1 %v311_v8, %s863_s22  ;;  %v312_v9 = vsub.f32 0.0, %v311_v8 }
 0x15e   : > { %318 = vrot.lane.b32.xlu1 %v312_v9, %s864_s23 }
 0x192   : > { %v293_v26 = vpop.xlane.xlu0 %292 }
 0x193   : > { %v294_v27 = vrot.slane %v293_v26, 4 }
 0x195   : > { %v295_v28 = vadd.f32 %v294_v27, %v293_v26 }
 0x197   : > { %v296_v29 = vrot.slane %v295_v28, 2 }
 0x199   : > { %v297_v30 = vadd.f32 %v296_v29, %v295_v28 }
 0x19b   : > { %v298_v31 = vrot.slane %v297_v30, 1 }
 0x19d   : > { %v299_v32 = vadd.f32 %v298_v31, %v297_v30 }
 0x19f   : > { %629 = vpush %v299_v32 }
 0x1cc   : > { %v315_v13 = vpop.permute.xlu1 %314 }
 0x1d0   : > { %v319_v14 = vpop.permute.xlu1 %318  ;;  %s630_s29 = spop %629 }
 0x1d1   : > { %v321_v16 = vsel %vm304_vm3, %v315_v13, %v319_v14 }
 0x1d2   : > { %619 = vmatpush3.msra.mxu1 %v321_v16 }
 0x1d3   : > { %621 = vmatmul.mubr.msk.f32.vlgmr.msra.gmra.mrb[0].mxu1 %vm324_vm2, %v323_v15 }
 0x2a6   : > { %v394_v21 = vpop.f32.mrb[0].mxu1 }
 0x2a7   : > { %v468_v22 = vadd.f32 %v467_v18, %v394_v21  ;;  %v622_v23 = vpop.f32.mrb[1].mxu1 }
 0x2a9   : > { %v471_v24 = vmul.f32 %v468_v22, %v468_v22 }
 0x2ab   : > { %v472_v25 = vsel %vm290_vm4, %v471_v24, 0.0 }
 0x2ac   : > { %473 = vadd.xlane.f32.xlu1 %v472_v25 }
 0x339   : > { %v474_v33 = vpop.xlane.xlu1 %473 }
 0x33a   : > { %v475_v34 = vrot.slane %v474_v33, 4 }
 0x33c   : > { %v476_v35 = vadd.f32 %v475_v34, %v474_v33 }
 0x33e   : > { %v477_v36 = vrot.slane %v476_v35, 2 }
 0x340   : > { %v478_v37 = vadd.f32 %v477_v36, %v476_v35 }
 0x342   : > { %v479_v38 = vrot.slane %v478_v37, 1 }
 0x344   : > { %v480_v39 = vadd.f32 %v479_v38, %v478_v37 }
 0x346   : > { %631 = vpush %v480_v39 }
 0x377   : > { %s632_s21 = spop %631 }
 0x378   : > { %s482_s13 = sadd.f32 %s632_s21, %s630_s29 }
 0x37a   : > { %v483_v40 = vstv %s482_s13 }
 0x37b   : > { %485 = vst.msk [vmem:[%s285_s9] sm:$0x1] %vm484_vm5, %v483_v40 }
 0x37c PF: > { %s20_s20 = sadd.s32 1, %s855_s20   ;;  %s1116_s15 = smov %s839_s16 }
 0x37d   : > { %p17_p8 = scmp.ge.s32.totalorder %s20_s20, 4   ;;  %s1117_s16 = smov %s843_s17 }
 0x37e   : > { %s1118_s17 = smov %s983_s5  ;;  %s1119_s18 = smov %s851_s19 }
 0x37f   : > { %s1120_s19 = smov %s1122_s28  ;;  %19 = sbr.rel (!%p17_p8) target bundleno = 6 (0x6), region = 93 }
 0x386   :  { %509 = vsyncpa [#allocation3], 1 }
 0x387   :  { %511 = vsyncpa [#allocation3 + $0x1], 1 }
 0x388   :  { %512 = vsyncpa [#allocation5], 1 }
 0x389   :  { %514 = vsyncpa [#allocation5 + $0x1], 1 }

</bundles_post_ra>
